<compile_context>
chip_gen: v5e
topology: v5e:2x2
jax: 0.10.0
libtpu: 0.0.40
codegen_flags: <defaults>
</compile_context>

<pallas_src>
import jax
import jax.numpy as jnp
from jax.experimental import pallas as pl
from jax.experimental.pallas import tpu as pltpu

# Fixed 5x5 convolution weights from the module's forward().
_C, _D, _E = 0.5, -0.3, -5.5
_KERNEL_5x5 = (
    (_C, _C, _C, _C, _C),
    (_C, _D, _D, _D, _C),
    (_C, _D, _E, _D, _C),
    (_C, _D, _D, _D, _C),
    (_C, _C, _C, _C, _C),
)
_KH, _KW = 5, 5

# Below this per-plane byte count the strided squeezed-channel DMA chunks are
# too small to be efficient; select channel 0 in the wrapper instead.
_SMALL_PLANE_BYTES = 32 << 10


def _round_up(x, m):
    return -(-x // m) * m


def _padded_plane_bytes(h, w):
    """f32 bytes of an (h, w) plane after (8, 128) vreg tiling/padding."""
    return _round_up(max(h, 1), 8) * _round_up(max(w, 1), 128) * 4


def _vmem_config():
    """(vmem_limit_bytes, per-grid-step tile budget) for this chip generation."""
    phys = 64 << 20  # conservative default = v7x physical VMEM
    try:
        info = pltpu.get_tpu_info()
        phys = int(getattr(info, "vmem_capacity_bytes", phys) or phys)
    except Exception:
        pass
    if phys >= (128 << 20):          # v5e / v6e: 128 MiB physical
        return 64 << 20, 40 << 20
    return 32 << 20, 16 << 20        # v7x (64 MiB physical) or unknown


def _choose_tb(N, H, W, budget_bytes):
    """Batch-tile size from vreg-padded per-image VMEM footprint."""
    H_out, W_out = H - _KH + 1, W - _KW + 1
    # 2x double-buffered input + loaded copy, horizontal-sum temporaries,
    # vertical sums / combine temporaries + 2x double-buffered output.
    per_img = (3 * _padded_plane_bytes(H, W)
               + 6 * _padded_plane_bytes(H, W_out)
               + 6 * _padded_plane_bytes(H_out, W_out))
    # TODO(synk): planes whose padded footprint alone exceeds the budget
    # (e.g. >=2Kx2K images) need row tiling with a 4-row halo; not needed for
    # the shapes exercised here.
    return max(1, min(N, budget_bytes // per_img))


def _make_conv_kernel(H, W):
    H_out, W_out = H - _KH + 1, W - _KW + 1
    C, D, E = _C, _D, _E

    def conv5x5_kernel(x_ref, o_ref):
        # x_ref: (TB, H, W) channel-0 planes; o_ref: (TB, H_out, W_out).
        x = x_ref[...]

        # Horizontal (lane-axis) running sums, shared between the two boxes.
        c0 = x[:, :, 0:W_out]
        c1 = x[:, :, 1:1 + W_out]
        c2 = x[:, :, 2:2 + W_out]
        c3 = x[:, :, 3:3 + W_out]
        c4 = x[:, :, 4:4 + W_out]
        h3 = c1 + c2 + c3          # inner 3-wide row sums, rows 0..H-1
        h5 = h3 + c0 + c4          # full 5-wide row sums, rows 0..H-1

        # Vertical (sublane-axis) sums -> box sums per output pixel.
        s3 = (h3[:, 1:1 + H_out, :]
              + h3[:, 2:2 + H_out, :]
              + h3[:, 3:3 + H_out, :])
        s5 = (h5[:, 0:H_out, :]
              + h5[:, 1:1 + H_out, :]
              + h5[:, 2:2 + H_out, :]
              + h5[:, 3:3 + H_out, :]
              + h5[:, 4:4 + H_out, :])
        center = c2[:, 2:2 + H_out, :]   # x[:, i+2, j+2]

        # Outer ring weight C, inner ring D, center E:
        #   out = C*box5 + (D-C)*box3 + (E-D)*center
        o_ref[...] = C * s5 + (D - C) * s3 + (E - D) * center

    return conv5x5_kernel, H_out, W_out


def feature_extractor_forward(x):
    """x: (N, C, H, W) float32. Returns (N, 1, H-4, W-4) float32."""
    N, C, H, W = x.shape
    assert H >= _KH and W >= _KW, "spatial dims must be >= 5 for VALID 5x5 conv"
    kernel_fn, H_out, W_out = _make_conv_kernel(H, W)
    vmem_limit, budget = _vmem_config()
    tb = _choose_tb(N, H, W, budget)
    grid = (pl.cdiv(N, tb),)

    # TODO(synk): plt.imshow(x1[0]) in the PyTorch forward is a plotting side
    # effect with no Pallas equivalent; it is intentionally omitted.

    if H * W * 4 < _SMALL_PLANE_BYTES:
        # Small planes: one contiguous XLA pass for channel selection, then a
        # single large contiguous DMA per grid step (avoids sub-KiB strided
        # channel chunks).
        x_in = x[:, 0]                                    # (N, H, W)
        in_spec = pl.BlockSpec((tb, H, W), lambda n: (n, 0, 0))
    else:
        # Large planes: fold channel-0 selection into the BlockSpec (squeezed
        # C dim) so only channel 0's bytes are DMA'd out of the NCHW tensor.
        x_in = x
        in_spec = pl.BlockSpec((tb, None, H, W), lambda n: (n, 0, 0, 0))

    # TODO(synk): W_out is rarely a multiple of 128, so output stores are
    # masked vst.msk.  Padding the output width to 128 would multiply output
    # HBM write bytes by ~W_pad/W_out for small images (HBM-bound kernel), so
    # the natural layout is kept; a batch-on-lane relayout only pays off for
    # very large N per tile.
    # TODO(synk): on v7x, pltpu.CORE_PARALLEL on the batch axis would split
    # the grid across both TensorCores; kept "parallel" here for portability
    # across v5e/v6e/v7x.
    out = pl.pallas_call(
        kernel_fn,
        out_shape=jax.ShapeDtypeStruct((N, H_out, W_out), jnp.float32),
        grid_spec=pltpu.PrefetchScalarGridSpec(
            num_scalar_prefetch=0,
            grid=grid,
            in_specs=[in_spec],
            out_specs=pl.BlockSpec((tb, H_out, W_out), lambda n: (n, 0, 0)),
        ),
        compiler_params=pltpu.CompilerParams(
            dimension_semantics=("parallel",),
            vmem_limit_bytes=vmem_limit,
        ),
    )(x_in)

    return out[:, None]   # NCHW: (N, 1, H_out, W_out)


def _reference(x):
    """Pure-JAX reference for correctness check."""
    x1 = x[:, 0:1]  # (N, 1, H, W)
    w = jnp.asarray(_KERNEL_5x5, jnp.float32)[None, None]  # (1,1,5,5)
    return jax.lax.conv_general_dilated(
        x1, w, window_strides=(1, 1), padding="VALID",
        dimension_numbers=("NCHW", "OIHW", "NCHW"))


if __name__ == "__main__":
    key = jax.random.PRNGKey(0)
    N, C, H, W = 2, 4, 16, 16
    x = jax.random.normal(key, (N, C, H, W), dtype=jnp.float32)

    out = feature_extractor_forward(x)
    out = jax.block_until_ready(out)

    ref = jax.block_until_ready(_reference(x))
    assert out.shape == (N, 1, H - 4, W - 4), out.shape
    assert jnp.allclose(out, ref, atol=1e-4, rtol=1e-4), \
        float(jnp.max(jnp.abs(out - ref)))

    print("KERNEL_OK")
</pallas_src>

<mosaic_0001>
module attributes {stable_mosaic.version = 11 : i64} {
  func.func @conv5x5_kernel(%arg0: i32, %arg1: memref<2x16x16xf32, #tpu.memory_space<vmem>>, %arg2: memref<2x12x12xf32, #tpu.memory_space<vmem>>) attributes {dimension_semantics = [#tpu.dimension_semantics<parallel>], iteration_bounds = array<i64: 1>, scalar_prefetch = 0 : i64, scratch_operands = 0 : i64, tpu.core_type = #tpu.core_type<tc>, window_params = [{transform_indices = @transform_0, window_bounds = array<i64: 2, 16, 16>}, {transform_indices = @transform_1, window_bounds = array<i64: 2, 12, 12>}]} {
    %c0 = arith.constant 0 : index
    %c0_0 = arith.constant 0 : index
    %c0_1 = arith.constant 0 : index
    %0 = vector.load %arg1[%c0, %c0_0, %c0_1] : memref<2x16x16xf32, #tpu.memory_space<vmem>>, vector<2x16x16xf32>
    %1 = vector.extract_strided_slice %0 {offsets = [0, 0, 0], sizes = [2, 16, 12], strides = [1, 1, 1]} : vector<2x16x16xf32> to vector<2x16x12xf32>
    %2 = vector.extract_strided_slice %0 {offsets = [0, 0, 1], sizes = [2, 16, 12], strides = [1, 1, 1]} : vector<2x16x16xf32> to vector<2x16x12xf32>
    %3 = vector.extract_strided_slice %0 {offsets = [0, 0, 2], sizes = [2, 16, 12], strides = [1, 1, 1]} : vector<2x16x16xf32> to vector<2x16x12xf32>
    %4 = vector.extract_strided_slice %0 {offsets = [0, 0, 3], sizes = [2, 16, 12], strides = [1, 1, 1]} : vector<2x16x16xf32> to vector<2x16x12xf32>
    %5 = vector.extract_strided_slice %0 {offsets = [0, 0, 4], sizes = [2, 16, 12], strides = [1, 1, 1]} : vector<2x16x16xf32> to vector<2x16x12xf32>
    %6 = arith.addf %2, %3 : vector<2x16x12xf32>
    %7 = arith.addf %6, %4 : vector<2x16x12xf32>
    %8 = arith.addf %7, %1 : vector<2x16x12xf32>
    %9 = arith.addf %8, %5 : vector<2x16x12xf32>
    %10 = vector.extract_strided_slice %7 {offsets = [0, 1, 0], sizes = [2, 12, 12], strides = [1, 1, 1]} : vector<2x16x12xf32> to vector<2x12x12xf32>
    %11 = vector.extract_strided_slice %7 {offsets = [0, 2, 0], sizes = [2, 12, 12], strides = [1, 1, 1]} : vector<2x16x12xf32> to vector<2x12x12xf32>
    %12 = arith.addf %10, %11 : vector<2x12x12xf32>
    %13 = vector.extract_strided_slice %7 {offsets = [0, 3, 0], sizes = [2, 12, 12], strides = [1, 1, 1]} : vector<2x16x12xf32> to vector<2x12x12xf32>
    %14 = arith.addf %12, %13 : vector<2x12x12xf32>
    %15 = vector.extract_strided_slice %9 {offsets = [0, 0, 0], sizes = [2, 12, 12], strides = [1, 1, 1]} : vector<2x16x12xf32> to vector<2x12x12xf32>
    %16 = vector.extract_strided_slice %9 {offsets = [0, 1, 0], sizes = [2, 12, 12], strides = [1, 1, 1]} : vector<2x16x12xf32> to vector<2x12x12xf32>
    %17 = arith.addf %15, %16 : vector<2x12x12xf32>
    %18 = vector.extract_strided_slice %9 {offsets = [0, 2, 0], sizes = [2, 12, 12], strides = [1, 1, 1]} : vector<2x16x12xf32> to vector<2x12x12xf32>
    %19 = arith.addf %17, %18 : vector<2x12x12xf32>
    %20 = vector.extract_strided_slice %9 {offsets = [0, 3, 0], sizes = [2, 12, 12], strides = [1, 1, 1]} : vector<2x16x12xf32> to vector<2x12x12xf32>
    %21 = arith.addf %19, %20 : vector<2x12x12xf32>
    %22 = vector.extract_strided_slice %9 {offsets = [0, 4, 0], sizes = [2, 12, 12], strides = [1, 1, 1]} : vector<2x16x12xf32> to vector<2x12x12xf32>
    %23 = arith.addf %21, %22 : vector<2x12x12xf32>
    %24 = vector.extract_strided_slice %3 {offsets = [0, 2, 0], sizes = [2, 12, 12], strides = [1, 1, 1]} : vector<2x16x12xf32> to vector<2x12x12xf32>
    %cst = arith.constant 5.000000e-01 : f32
    %25 = vector.broadcast %cst : f32 to vector<2x12x12xf32>
    %26 = arith.mulf %25, %23 : vector<2x12x12xf32>
    %cst_2 = arith.constant -8.000000e-01 : f32
    %27 = vector.broadcast %cst_2 : f32 to vector<2x12x12xf32>
    %28 = arith.mulf %27, %14 : vector<2x12x12xf32>
    %29 = arith.addf %26, %28 : vector<2x12x12xf32>
    %cst_3 = arith.constant -5.200000e+00 : f32
    %30 = vector.broadcast %cst_3 : f32 to vector<2x12x12xf32>
    %31 = arith.mulf %30, %24 : vector<2x12x12xf32>
    %32 = arith.addf %29, %31 : vector<2x12x12xf32>
    %c0_4 = arith.constant 0 : index
    %c0_5 = arith.constant 0 : index
    %c0_6 = arith.constant 0 : index
    %33 = vector.load %arg2[%c0_4, %c0_5, %c0_6] : memref<2x12x12xf32, #tpu.memory_space<vmem>>, vector<2x12x12xf32>
    tpu.vector_store %arg2[%c0_4, %c0_5, %c0_6], %32 {strides = array<i32>} : memref<2x12x12xf32, #tpu.memory_space<vmem>>, vector<2x12x12xf32>,
    return
  }
  func.func @transform_0(%arg0: i32) -> (i32, i32, i32) {
    %c0_i32 = arith.constant 0 : i32
    %c0_i32_0 = arith.constant 0 : i32
    %c0_i32_1 = arith.constant 0 : i32
    return %arg0, %c0_i32, %c0_i32_0 : i32, i32, i32
  }
  func.func @transform_1(%arg0: i32) -> (i32, i32, i32) {
    %c0_i32 = arith.constant 0 : i32
    %c0_i32_0 = arith.constant 0 : i32
    %c0_i32_1 = arith.constant 0 : i32
    return %arg0, %c0_i32, %c0_i32_0 : i32, i32, i32
  }
}

</mosaic_0001>

<bundles_post_ra>
// kernel: tpu_custom_call.1
= control target key start
LH: loop header
LB: loop body
LE: loop exit
PB: predicated region body
PF: predicated region fallthrough
CT: control target
= control target key end

     0   :  { %6 = vsyncpa [#allocation3], 0  ;;  %s308_s9 = smov [#allocation2]   ;;  %s309_s11 = smov 128   ;;  %s368_s0 = inlined_call_operand.hbm [shape: f32[2,16,16], index: 0, kind: input, shape index: {}]   ;;  %s369_s1 = inlined_call_operand.vmem [shape: f32[2,12,12], index: 1, kind: output, shape index: {}]  }
   0x1   :  { %s11_s8 = sshll.u32 %s368_s0, 4  ;;  %s13_s10 = sshll.u32 %s308_s9, 4  ;;  %s12_s8 = int_to_ptr.hbm [resolvable:$true] %s11_s8  ;;  %s14_s10 = int_to_ptr.vmem [resolvable:$true] %s13_s10 }
   0x2   :  { %s310_s12 = smov 8  }
   0x3   :  { %19 = dma.hbm_to_vmem [thread:$0]  %s12_s8, 512, %s14_s10, [#allocation3], %s309_s11, %s309_s11, %s310_s12  }
   0x4   :  { %306 = dma.done.wait [#allocation3], 512  }
   0x5   :  { %307 = vsyncadd [#allocation3], 4294966784  ;;  %v26_v0 = vld [vmem:[#allocation2 + $0x10] sm:$0xff]  ;;  %v24_v1 = vld [vmem:[#allocation2] sm:$0xff]  ;;  %s311_s13 = smov 127   ;;  %s312_s14 = smov 126  }
   0x6   :  { %36 = vrot.lane.b32.xlu1 %v26_v0, %s311_s13  ;;  %32 = vrot.lane.b32.xlu0 %v24_v1, %s311_s13  ;;  %v27_v2 = vld [vmem:[#allocation2 + $0x18] sm:$0xff]  ;;  %v25_v3 = vld [vmem:[#allocation2 + $0x8] sm:$0xff]  ;;  %s313_s0 = smov 1   ;;  %v218_v4 = vmul.f32 -5.2, %v24_v1  ;;  %s314_s15 = smov 125  }
   0x7   :  { %48 = vrot.lane.b32.xlu2 %v24_v1, %s312_s14  ;;  %v219_v5 = vmul.f32 -5.2, %v25_v3  ;;  %vm115_vm0 = vcmask 1045504   ;;  %v221_v9 = vmul.f32 -5.2, %v27_v2  ;;  %vm100_vm1 = vcmask 1046528  }
   0x8   :  { %v226_v6 = vrot.slane %v218_v4, 2  ;;  %v220_v10 = vmul.f32 -5.2, %v26_v0  ;;  %vm162_vm2 = vcmask 1044480   ;;  %vm177_vm3 = vcmask 1043456  }
   0x9   :  { %v227_v7 = vrot.slane %v219_v5, 2  ;;  %v230_v11 = vrot.slane %v221_v9, 2  ;;  %vm264_vm4 = vcmask 97280   ;;  %vm266_vm5 = vcmask 93184  }
   0xa   :  { %v229_v12 = vrot.slane %v220_v10, 2 }
   0xb   :  { %v228_v8 = vsel %vm115_vm0, %v226_v6, %v227_v7 }
   0xc   :  { %v231_v13 = vsel %vm115_vm0, %v229_v12, %v230_v11 }
   0xe   :  { %38 = vrot.lane.b32.xlu1 %v27_v2, %s311_s13  ;;  %34 = vrot.lane.b32.xlu0 %v25_v3, %s311_s13 }
   0xf   :  { %50 = vrot.lane.b32.xlu2 %v25_v3, %s312_s14 }
  0x16   :  { %54 = vrot.lane.b32.xlu1 %v27_v2, %s312_s14  ;;  %52 = vrot.lane.b32.xlu0 %v26_v0, %s312_s14 }
  0x17   :  { %64 = vrot.lane.b32.xlu2 %v24_v1, %s313_s0 }
  0x1e   :  { %68 = vrot.lane.b32.xlu1 %v26_v0, %s313_s0  ;;  %66 = vrot.lane.b32.xlu0 %v25_v3, %s313_s0 }
  0x1f   :  { %70 = vrot.lane.b32.xlu2 %v27_v2, %s313_s0 }
  0x26   :  { %82 = vrot.lane.b32.xlu1 %v25_v3, %s314_s15  ;;  %80 = vrot.lane.b32.xlu0 %v24_v1, %s314_s15 }
  0x27   :  { %84 = vrot.lane.b32.xlu2 %v26_v0, %s314_s15 }
  0x2e   :  { %86 = vrot.lane.b32.xlu0 %v27_v2, %s314_s15  ;;  %232 = vrot.lane.b32.xlu1 %v228_v8, %s311_s13 }
  0x2f   :  { %234 = vrot.lane.b32.xlu2 %v227_v7, %s311_s13 }
  0x36   :  { %238 = vrot.lane.b32.xlu1 %v230_v11, %s311_s13  ;;  %236 = vrot.lane.b32.xlu0 %v231_v13, %s311_s13 }
  0x61   :  { %v49_v14 = vpop.permute.xlu2 %48 }
  0x69   :  { %v51_v17 = vpop.permute.xlu2 %50 }
  0x71   :  { %v65_v24 = vpop.permute.xlu2 %64 }
  0x78   :  { %v37_v15 = vpop.permute.xlu1 %36  ;;  %v33_v16 = vpop.permute.xlu0 %32 }
  0x79   :  { %v44_v21 = vadd.f32 %v33_v16, %v24_v1  ;;  %v46_v30 = vadd.f32 %v37_v15, %v26_v0  ;;  %v71_v33 = vpop.permute.xlu2 %70 }
  0x7b   :  { %v60_v26 = vadd.f32 %v49_v14, %v44_v21 }
  0x7d   :  { %v101_v29 = vrot.slane %v60_v26, 1  ;;  %v116_v40 = vrot.slane %v60_v26, 2  ;;  %v76_v43 = vadd.f32 %v65_v24, %v60_v26 }
  0x80   :  { %v39_v18 = vpop.permute.xlu1 %38  ;;  %v35_v19 = vpop.permute.xlu0 %34 }
  0x81   :  { %v45_v20 = vadd.f32 %v35_v19, %v25_v3  ;;  %v47_v28 = vadd.f32 %v39_v18, %v27_v2  ;;  %v85_v55 = vpop.permute.xlu2 %84 }
  0x83   :  { %v61_v25 = vadd.f32 %v51_v17, %v45_v20 }
  0x85   :  { %v102_v27 = vrot.slane %v61_v25, 1  ;;  %v117_v37 = vrot.slane %v61_v25, 2 }
  0x87   :  { %v103_v34 = vsel %vm100_vm1, %v101_v29, %v102_v27  ;;  %v112_v38 = vadd.f32 %v102_v27, %v61_v25  ;;  %v118_v45 = vsel %vm115_vm0, %v116_v40, %v117_v37 }
  0x88   :  { %v55_v22 = vpop.permute.xlu1 %54  ;;  %v53_v23 = vpop.permute.xlu0 %52  ;;  %v111_v39 = vadd.f32 %v103_v34, %v60_v26 }
  0x89   :  { %v63_v35 = vadd.f32 %v55_v22, %v47_v28  ;;  %v62_v36 = vadd.f32 %v53_v23, %v46_v30  ;;  %v127_v48 = vadd.f32 %v117_v37, %v112_v38  ;;  %v235_v37 = vpop.permute.xlu2 %234 }
  0x8a   :  { %v126_v49 = vadd.f32 %v118_v45, %v111_v39 }
  0x8b   :  { %v105_v41 = vrot.slane %v63_v35, 1  ;;  %v104_v42 = vrot.slane %v62_v36, 1  ;;  %v119_v53 = vrot.slane %v62_v36, 2  ;;  %v197_v60 = vmul.f32 -0.8, %v127_v48 }
  0x8c   :  { %v196_v61 = vmul.f32 -0.8, %v126_v49  ;;  %v120_v63 = vrot.slane %v63_v35, 2  ;;  %v79_v5 = vadd.f32 %v71_v33, %v63_v35 }
  0x8d   :  { %v106_v52 = vsel %vm100_vm1, %v104_v42, %v105_v41  ;;  %v114_v62 = vadd.f32 %v105_v41, %v63_v35  ;;  %v205_v13 = vrot.slane %v197_v60, 1 }
  0x8e   :  { %v113_v4 = vadd.f32 %v106_v52, %v62_v36  ;;  %v204_v15 = vrot.slane %v196_v61, 1  ;;  %v121_v20 = vsel %vm115_vm0, %v119_v53, %v120_v63 }
  0x8f   :  { %v129_v16 = vadd.f32 %v120_v63, %v114_v62 }
  0x90   :  { %v69_v31 = vpop.permute.xlu1 %68  ;;  %v67_v32 = vpop.permute.xlu0 %66  ;;  %v128_v23 = vadd.f32 %v121_v20, %v113_v4  ;;  %v206_v30 = vsel %vm100_vm1, %v204_v15, %v205_v13 }
  0x91   :  { %v77_v44 = vadd.f32 %v67_v32, %v61_v25  ;;  %v78_v54 = vadd.f32 %v69_v31, %v62_v36  ;;  %v199_v32 = vmul.f32 -0.8, %v129_v16 }
  0x92   :  { %v198_v41 = vmul.f32 -0.8, %v128_v23 }
  0x93   :  { %v94_v6 = vadd.f32 %v85_v55, %v78_v54  ;;  %v208_v55 = vrot.slane %v199_v32, 1 }
  0x95   :  { %v137_v21 = vrot.slane %v94_v6, 1  ;;  %v151_v28 = vrot.slane %v94_v6, 2  ;;  %v166_v40 = vrot.slane %v94_v6, 3 }
  0x98   :  { %v83_v46 = vpop.permute.xlu1 %82  ;;  %v81_v47 = vpop.permute.xlu0 %80 }
  0x99   :  { %v93_v50 = vadd.f32 %v83_v46, %v77_v44  ;;  %v92_v51 = vadd.f32 %v81_v47, %v76_v43 }
  0x9b   :  { %v134_v56 = vrot.slane %v92_v51, 1  ;;  %v148_v57 = vrot.slane %v92_v51, 2  ;;  %v135_v58 = vrot.slane %v93_v50, 1  ;;  %v149_v59 = vrot.slane %v93_v50, 2 }
  0x9c   :  { %v164_v1 = vrot.slane %v93_v50, 3  ;;  %v163_v3 = vrot.slane %v92_v51, 3  ;;  %v179_v9 = vrot.slane %v93_v50, 4  ;;  %v178_v11 = vrot.slane %v92_v51, 4 }
  0x9d   :  { %v145_v0 = vadd.f32 %v135_v58, %v93_v50  ;;  %v136_v2 = vsel %vm100_vm1, %v134_v56, %v135_v58  ;;  %v150_v10 = vsel %vm115_vm0, %v148_v57, %v149_v59  ;;  %v207_v57 = vrot.slane %v198_v41, 1 }
  0x9e   :  { %v144_v7 = vadd.f32 %v136_v2, %v92_v51  ;;  %v165_v19 = vsel %vm162_vm2, %v163_v3, %v164_v1  ;;  %v180_v25 = vsel %vm177_vm3, %v178_v11, %v179_v9  ;;  %v181_v51 = vrot.slane %v94_v6, 4 }
  0x9f   :  { %v159_v8 = vadd.f32 %v149_v59, %v145_v0  ;;  %v209_v63 = vsel %vm100_vm1, %v207_v57, %v208_v55 }
  0xa0   :  { %v87_v12 = vpop.permute.xlu0 %86  ;;  %v158_v14 = vadd.f32 %v150_v10, %v144_v7  ;;  %v233_v31 = vpop.permute.xlu1 %232 }
  0xa1   :  { %v95_v17 = vadd.f32 %v87_v12, %v79_v5  ;;  %v174_v18 = vadd.f32 %v164_v1, %v159_v8 }
  0xa2   :  { %v173_v22 = vadd.f32 %v165_v19, %v158_v14 }
  0xa3   :  { %v189_v24 = vadd.f32 %v179_v9, %v174_v18  ;;  %v138_v26 = vrot.slane %v95_v17, 1  ;;  %v152_v27 = vrot.slane %v95_v17, 2  ;;  %v167_v35 = vrot.slane %v95_v17, 3 }
  0xa4   :  { %v188_v29 = vadd.f32 %v180_v25, %v173_v22  ;;  %v182_v44 = vrot.slane %v95_v17, 4 }
  0xa5   :  { %v193_v33 = vmul.f32 0.5, %v189_v24  ;;  %v147_v34 = vadd.f32 %v138_v26, %v95_v17  ;;  %v139_v36 = vsel %vm100_vm1, %v137_v21, %v138_v26  ;;  %v153_v45 = vsel %vm115_vm0, %v151_v28, %v152_v27 }
  0xa6   :  { %v192_v38 = vmul.f32 0.5, %v188_v29  ;;  %v146_v39 = vadd.f32 %v139_v36, %v94_v6  ;;  %v168_v50 = vsel %vm162_vm2, %v166_v40, %v167_v35  ;;  %v183_v56 = vsel %vm177_vm3, %v181_v51, %v182_v44 }
  0xa7   :  { %v215_v42 = vadd.f32 %v205_v13, %v193_v33  ;;  %v161_v43 = vadd.f32 %v152_v27, %v147_v34 }
  0xa8   :  { %v214_v46 = vadd.f32 %v206_v30, %v192_v38  ;;  %v160_v47 = vadd.f32 %v153_v45, %v146_v39  ;;  %v239_v60 = vpop.permute.xlu1 %238  ;;  %v237_v0 = vpop.permute.xlu0 %236 }
  0xa9   :  { %v245_v48 = vadd.f32 %v235_v37, %v215_v42  ;;  %v176_v49 = vadd.f32 %v167_v35, %v161_v43 }
  0xaa   :  { %v244_v52 = vadd.f32 %v233_v31, %v214_v46  ;;  %v175_v53 = vadd.f32 %v168_v50, %v160_v47 }
  0xab   :  { %254 = vrot.lane.b32.xlu0 %v245_v48, %s311_s13  ;;  %v191_v54 = vadd.f32 %v182_v44, %v176_v49 }
  0xac   :  { %252 = vrot.lane.b32.xlu2 %v244_v52, %s311_s13  ;;  %v190_v58 = vadd.f32 %v183_v56, %v175_v53 }
  0xad   :  { %v195_v59 = vmul.f32 0.5, %v191_v54 }
  0xae   :  { %v194_v61 = vmul.f32 0.5, %v190_v58 }
  0xaf   :  { %v217_v62 = vadd.f32 %v208_v55, %v195_v59 }
  0xb0   :  { %v216_v1 = vadd.f32 %v209_v63, %v194_v61 }
  0xb1   :  { %v247_v2 = vadd.f32 %v239_v60, %v217_v62 }
  0xb2   :  { %v246_v3 = vadd.f32 %v237_v0, %v216_v1 }
  0xb4   :  { %256 = vrot.lane.b32.xlu1 %v246_v3, %s311_s13  ;;  %258 = vrot.lane.b32.xlu2 %v247_v2, %s311_s13 }
 0x106   :  { %v253_v4 = vpop.permute.xlu2 %252 }
 0x107   :  { %265 = vst.msk [vmem:[%s369_s1] sm:$0xff] %vm264_vm4, %v253_v4 }
 0x10e   :  { %v259_v5 = vpop.permute.xlu2 %258 }
 0x10f   :  { %269 = vst.msk [vmem:[%s369_s1 + $0x18] sm:$0xf] %vm266_vm5, %v259_v5 }
 0x11d   :  { %v255_v6 = vpop.permute.xlu0 %254 }
 0x11e   :  { %267 = vst.msk [vmem:[%s369_s1 + $0x8] sm:$0xf] %vm266_vm5, %v255_v6 }
 0x126   :  { %v257_v7 = vpop.permute.xlu1 %256 }
 0x127   :  { %268 = vst.msk [vmem:[%s369_s1 + $0x10] sm:$0xff] %vm264_vm4, %v257_v7 }
 0x128   :  { %274 = vsyncpa [#allocation3], 1 }

</bundles_post_ra>
